<compile_context>
chip_gen: v5e
topology: v5e:2x2
jax: 0.10.0
libtpu: 0.0.40
codegen_flags: <defaults>
</compile_context>

<pallas_src>
import functools

import jax
import jax.numpy as jnp
from jax.experimental import pallas as pl
from jax.experimental.pallas import tpu as pltpu


# ----------------------------------------------------------------------------
# Pallas kernels
# ----------------------------------------------------------------------------
def _gat_layer_kernel(x_ref, w_ref, a_ref, adj_ref, b_ref, o_ref, *,
                      negative_slope, apply_elu):
    """One GAT head per grid step: projection + attention + aggregation."""
    # Per-head projection on the MXU, fed directly from VMEM (fc has no bias).
    z = jnp.dot(x_ref[...], w_ref[0], preferred_element_type=jnp.float32)  # (N, F)

    # Both attention scores with one matmul: (N, F) @ (F, 2) -> [el | er].
    scores = jnp.dot(z, a_ref[0], preferred_element_type=jnp.float32)      # (N, 2)
    el = scores[:, 0:1]        # (N, 1) source-side scores
    er = scores[:, 1:2]        # (N, 1) destination-side scores

    # e[i, j] = leaky_relu(el[j] + er[i]) for edge j -> i.
    e = er + el.T                                                           # (N_dst, N_src)
    e = jnp.where(e > 0, e, negative_slope * e)

    # Mask non-edges with a dtype-aware large-negative value (adj is int8).
    mask = adj_ref[...].astype(jnp.float32) > 0.0
    big_neg = float(jnp.finfo(e.dtype).min) * 0.5
    e = jnp.where(mask, e, big_neg)

    # Edge softmax over incoming edges (axis=1 == source nodes).
    e_max = jnp.max(e, axis=1, keepdims=True)
    p = jnp.where(mask, jnp.exp(e - e_max), 0.0)
    s = jnp.sum(p, axis=1, keepdims=True)
    alpha = p * pl.reciprocal(jnp.maximum(s, 1e-30), approx=True)

    out = jnp.dot(alpha, z, preferred_element_type=jnp.float32) + b_ref[0]  # (N, F)
    if apply_elu:
        # ELU: exp only on the clamped-negative branch (no inf in dead lanes).
        out = jnp.where(out > 0, out, jnp.exp(jnp.minimum(out, 0.0)) - 1.0)
    o_ref[0] = out


def _dd_kernel(x_ref, w1_ref, b1_ref, w2_ref, b2_ref, w3_ref, b3_ref, o_ref):
    """Fused 3-layer domain discriminator: intermediates stay in VMEM."""
    h = jnp.dot(x_ref[...], w1_ref[...], preferred_element_type=jnp.float32)
    h = jnp.maximum(h + b1_ref[...], 0.0)
    h = jnp.dot(h, w2_ref[...], preferred_element_type=jnp.float32)
    h = jnp.maximum(h + b2_ref[...], 0.0)
    o_ref[...] = (jnp.dot(h, w3_ref[...], preferred_element_type=jnp.float32)
                  + b3_ref[...])


# ----------------------------------------------------------------------------
# Wrappers
# ----------------------------------------------------------------------------
def gat_conv(params, x, adj_i8, negative_slope=0.2, apply_elu=True):
    """One DGL-style GATConv layer. x: (N, D_in) -> (N, H, F)."""
    w = params["w"]        # (H, D_in, F)   head-major fc weight (no bias)
    a = params["attn"]     # (H, F, 2)      [attn_l | attn_r] per head
    bias = params["bias"]  # (H, 1, F)      per-head output bias
    h, din, f = w.shape
    n = x.shape[0]

    out = pl.pallas_call(
        functools.partial(_gat_layer_kernel,
                          negative_slope=negative_slope, apply_elu=apply_elu),
        grid=(h,),
        in_specs=[
            pl.BlockSpec((n, din), lambda i: (0, 0)),        # x (shared)
            pl.BlockSpec((1, din, f), lambda i: (i, 0, 0)),  # W per head
            pl.BlockSpec((1, f, 2), lambda i: (i, 0, 0)),    # attn per head
            pl.BlockSpec((n, n), lambda i: (0, 0)),          # adjacency (int8, shared)
            pl.BlockSpec((1, 1, f), lambda i: (i, 0, 0)),    # bias per head
        ],
        out_specs=pl.BlockSpec((1, n, f), lambda i: (i, 0, 0)),
        out_shape=jax.ShapeDtypeStruct((h, n, f), jnp.float32),
        compiler_params=pltpu.CompilerParams(
            dimension_semantics=("parallel",),
            vmem_limit_bytes=48 * 1024 * 1024),
    )(x, w, a, adj_i8, bias)
    return out.transpose(1, 0, 2)   # (N, H, F) node-major for flatten / head split


def domain_discriminator(x, dd):
    """Fused MLP: relu(x@w1+b1) -> relu(@w2+b2) -> @w3+b3."""
    n, d = x.shape
    bm = n if n <= 256 else 256     # row tile (multiple of 8 or full)
    return pl.pallas_call(
        _dd_kernel,
        grid=(pl.cdiv(n, bm),),
        in_specs=[
            pl.BlockSpec((bm, d), lambda i: (i, 0)),
            pl.BlockSpec((d, 32), lambda i: (0, 0)),
            pl.BlockSpec((1, 32), lambda i: (0, 0)),
            pl.BlockSpec((32, 32), lambda i: (0, 0)),
            pl.BlockSpec((1, 32), lambda i: (0, 0)),
            pl.BlockSpec((32, 2), lambda i: (0, 0)),
            pl.BlockSpec((1, 2), lambda i: (0, 0)),
        ],
        out_specs=pl.BlockSpec((bm, 2), lambda i: (i, 0)),
        out_shape=jax.ShapeDtypeStruct((n, 2), jnp.float32),
        compiler_params=pltpu.CompilerParams(dimension_semantics=("parallel",)),
    )(x, dd["w1"], dd["b1"], dd["w2"], dd["b2"], dd["w3"], dd["b3"])


# ----------------------------------------------------------------------------
# Model glue (plain JAX: reshapes / parameter plumbing only)
# ----------------------------------------------------------------------------
def gat_forward(gat_params, x, adj_i8, num_layers):
    h = x
    for l in range(num_layers):
        h2d = h.reshape(h.shape[0], -1)                          # .flatten(1)
        h = gat_conv(gat_params[l], h2d, adj_i8, apply_elu=True)  # (N, H, F)
    heads = [h[:, i] for i in range(h.shape[1])]
    last = gat_conv(gat_params[-1], h.reshape(h.shape[0], -1), adj_i8,
                    apply_elu=False)                              # (N, H_last, C)
    logits = last.mean(axis=1)                                    # (N, C)
    return heads, logits


def magcl_forward(params, features_s, features_t, adj_s, adj_t, grl_lambda,
                  num_layers):
    head_s, pred_logit_s = gat_forward(params["gat"], features_s, adj_s, num_layers)
    emb_s = jnp.concatenate(head_s, axis=1)
    head_t, pred_logit_t = gat_forward(params["gat"], features_t, adj_t, num_layers)
    emb_t = jnp.concatenate(head_t, axis=1)

    emb = jnp.concatenate([emb_s, emb_t], axis=0)
    h_grl = emb  # grad_reverse(emb, grl_lambda) is identity in the forward pass

    d_logit = domain_discriminator(h_grl, params["dd"])
    return pred_logit_s, pred_logit_t, d_logit, emb_s, emb_t, head_s, head_t


# ----------------------------------------------------------------------------
# Deterministic parameter initialisation
# ----------------------------------------------------------------------------
def _xavier_normal(key, fan_in, fan_out, shape, gain):
    std = gain * (2.0 / (fan_in + fan_out)) ** 0.5
    return std * jax.random.normal(key, shape, jnp.float32)


def init_params(key, num_layers, in_dim, num_hidden, heads, num_classes,
                input_dim_mlp):
    gain = 2.0 ** 0.5
    gat = []
    dins = ([in_dim]
            + [num_hidden * heads[l - 1] for l in range(1, num_layers)]
            + [num_hidden * heads[num_layers - 1]])
    douts = [num_hidden] * num_layers + [num_classes]
    for l in range(num_layers + 1):
        key, kw, kl, kr = jax.random.split(key, 4)
        hh, ff, din = heads[l], douts[l], dins[l]
        w = _xavier_normal(kw, din, hh * ff, (din, hh * ff), gain)   # fc (bias=False)
        w = w.reshape(din, hh, ff).transpose(1, 0, 2)                # (H, D_in, F)
        attn_l = _xavier_normal(kl, ff, hh, (hh, ff), gain)
        attn_r = _xavier_normal(kr, ff, hh, (hh, ff), gain)
        gat.append({
            "w": w,                                                  # (H, D_in, F)
            "attn": jnp.stack([attn_l, attn_r], axis=-1),            # (H, F, 2)
            "bias": jnp.zeros((hh, 1, ff), jnp.float32),             # (H, 1, F)
        })

    key, k1, k2, k3 = jax.random.split(key, 4)
    dd = {
        "w1": _xavier_normal(k1, input_dim_mlp, 32, (input_dim_mlp, 32), 1.414),
        "b1": 0.1 * jnp.ones((1, 32), jnp.float32),
        "w2": _xavier_normal(k2, 32, 32, (32, 32), 1.414),
        "b2": 0.1 * jnp.ones((1, 32), jnp.float32),
        "w3": _xavier_normal(k3, 32, 2, (32, 2), 1.414),
        "b3": 0.1 * jnp.ones((1, 2), jnp.float32),
    }
    return {"gat": gat, "dd": dd}


# ----------------------------------------------------------------------------
# Driver
# ----------------------------------------------------------------------------
if __name__ == "__main__":
    num_layers = 2
    in_dim = 16
    num_hidden = 8
    heads = [2, 2, 1]          # length num_layers + 1
    num_classes = 4
    input_dim_mlp = num_hidden * heads[num_layers - 1]   # = 16
    n_s, n_t = 8, 8
    grl_lambda = 1.0

    key = jax.random.PRNGKey(0)
    key, kp, kfs, kft, kgs, kgt = jax.random.split(key, 6)

    params = init_params(kp, num_layers, in_dim, num_hidden, heads,
                         num_classes, input_dim_mlp)

    features_s = jax.random.normal(kfs, (n_s, in_dim), jnp.float32)
    features_t = jax.random.normal(kft, (n_t, in_dim), jnp.float32)

    # random adjacency with self loops so every node has >= 1 in-edge; carried
    # as int8 (the kernel only needs the edge mask).
    adj_s = (jax.random.bernoulli(kgs, 0.3, (n_s, n_s))
             | jnp.eye(n_s, dtype=bool)).astype(jnp.int8)
    adj_t = (jax.random.bernoulli(kgt, 0.3, (n_t, n_t))
             | jnp.eye(n_t, dtype=bool)).astype(jnp.int8)

    outs = magcl_forward(params, features_s, features_t, adj_s, adj_t,
                         grl_lambda, num_layers)
    (pred_logit_s, pred_logit_t, d_logit, emb_s, emb_t, head_s, head_t) = outs

    jax.block_until_ready((pred_logit_s, pred_logit_t, d_logit, emb_s, emb_t,
                           head_s, head_t))

    assert pred_logit_s.shape == (n_s, num_classes)
    assert pred_logit_t.shape == (n_t, num_classes)
    assert d_logit.shape == (n_s + n_t, 2)
    assert emb_s.shape == (n_s, input_dim_mlp)
    assert emb_t.shape == (n_t, input_dim_mlp)
    assert len(head_s) == heads[num_layers - 1]
    assert bool(jnp.all(jnp.isfinite(d_logit)))

    print("KERNEL_OK")
</pallas_src>

<mosaic_0001>
module attributes {stable_mosaic.version = 11 : i64} {
  func.func @_gat_layer_kernel(%arg0: i32, %arg1: memref<8x16xf32, #tpu.memory_space<vmem>>, %arg2: memref<1x16x8xf32, #tpu.memory_space<vmem>>, %arg3: memref<1x8x2xf32, #tpu.memory_space<vmem>>, %arg4: memref<8x8xi8, #tpu.memory_space<vmem>>, %arg5: memref<1x1x8xf32, #tpu.memory_space<vmem>>, %arg6: memref<1x8x8xf32, #tpu.memory_space<vmem>>) attributes {dimension_semantics = [#tpu.dimension_semantics<parallel>], iteration_bounds = array<i64: 2>, scalar_prefetch = 0 : i64, scratch_operands = 0 : i64, tpu.core_type = #tpu.core_type<tc>, window_params = [{pipeline_mode = #tpu.pipeline_mode<synchronous>, transform_indices = @transform_0, window_bounds = array<i64: 8, 16>}, {transform_indices = @transform_1, window_bounds = array<i64: 1, 16, 8>}, {transform_indices = @transform_2, window_bounds = array<i64: 1, 8, 2>}, {pipeline_mode = #tpu.pipeline_mode<synchronous>, transform_indices = @transform_3, window_bounds = array<i64: 8, 8>}, {transform_indices = @transform_4, window_bounds = array<i64: 1, 1, 8>}, {transform_indices = @transform_5, window_bounds = array<i64: 1, 8, 8>}]} {
    %c0 = arith.constant 0 : index
    %c0_0 = arith.constant 0 : index
    %0 = vector.load %arg1[%c0, %c0_0] : memref<8x16xf32, #tpu.memory_space<vmem>>, vector<8x16xf32>
    %c0_1 = arith.constant 0 : index
    %c0_2 = arith.constant 0 : index
    %c0_3 = arith.constant 0 : index
    %1 = vector.load %arg2[%c0_1, %c0_2, %c0_3] : memref<1x16x8xf32, #tpu.memory_space<vmem>>, vector<1x16x8xf32>
    %2 = vector.shape_cast %1 : vector<1x16x8xf32> to vector<16x8xf32>
    %cst = arith.constant dense<0.000000e+00> : vector<8x8xf32>
    %3 = tpu.matmul %0, %2, %cst {dimension_numbers = #tpu.dot_dimension_numbers<[1], [0], [0], [1], [0, 0, 1, 1], [], []>} : vector<8x16xf32>, vector<16x8xf32>, vector<8x8xf32> -> vector<8x8xf32>
    %c0_4 = arith.constant 0 : index
    %c0_5 = arith.constant 0 : index
    %c0_6 = arith.constant 0 : index
    %4 = vector.load %arg3[%c0_4, %c0_5, %c0_6] : memref<1x8x2xf32, #tpu.memory_space<vmem>>, vector<1x8x2xf32>
    %5 = vector.shape_cast %4 : vector<1x8x2xf32> to vector<8x2xf32>
    %cst_7 = arith.constant dense<0.000000e+00> : vector<8x2xf32>
    %6 = tpu.matmul %3, %5, %cst_7 {dimension_numbers = #tpu.dot_dimension_numbers<[1], [0], [0], [1], [0, 0, 1, 1], [], []>} : vector<8x8xf32>, vector<8x2xf32>, vector<8x2xf32> -> vector<8x2xf32>
    %7 = vector.extract_strided_slice %6 {offsets = [0, 0], sizes = [8, 1], strides = [1, 1]} : vector<8x2xf32> to vector<8x1xf32>
    %8 = vector.extract_strided_slice %6 {offsets = [0, 1], sizes = [8, 1], strides = [1, 1]} : vector<8x2xf32> to vector<8x1xf32>
    %9 = tpu.transpose %7, [1, 0] : vector<8x1xf32> -> vector<1x8xf32>
    %10 = vector.broadcast %8 : vector<8x1xf32> to vector<8x8xf32>
    %11 = vector.broadcast %9 : vector<1x8xf32> to vector<8x8xf32>
    %12 = arith.addf %10, %11 : vector<8x8xf32>
    %cst_8 = arith.constant 0.000000e+00 : f32
    %13 = vector.broadcast %cst_8 : f32 to vector<8x8xf32>
    %14 = arith.cmpf ogt, %12, %13 : vector<8x8xf32>
    %cst_9 = arith.constant 2.000000e-01 : f32
    %15 = vector.broadcast %cst_9 : f32 to vector<8x8xf32>
    %16 = arith.mulf %15, %12 : vector<8x8xf32>
    %17 = arith.select %14, %12, %16 : vector<8x8xi1>, vector<8x8xf32>
    %c0_10 = arith.constant 0 : index
    %c0_11 = arith.constant 0 : index
    %18 = vector.load %arg4[%c0_10, %c0_11] : memref<8x8xi8, #tpu.memory_space<vmem>>, vector<8x8xi8>
    %19 = arith.sitofp %18 : vector<8x8xi8> to vector<8x8xf32>
    %cst_12 = arith.constant 0.000000e+00 : f32
    %20 = vector.broadcast %cst_12 : f32 to vector<8x8xf32>
    %21 = arith.cmpf ogt, %19, %20 : vector<8x8xf32>
    %cst_13 = arith.constant -1.70141173E+38 : f32
    %22 = vector.broadcast %cst_13 : f32 to vector<8x8xf32>
    %23 = arith.select %21, %17, %22 : vector<8x8xi1>, vector<8x8xf32>
    %cst_14 = arith.constant dense<0xFF800000> : vector<8xf32>
    %24 = vector.multi_reduction <maximumf>, %23, %cst_14 [1] : vector<8x8xf32> to vector<8xf32>
    %25 = vector.shape_cast %24 : vector<8xf32> to vector<8x1xf32>
    %26 = vector.broadcast %25 : vector<8x1xf32> to vector<8x8xf32>
    %27 = arith.subf %23, %26 : vector<8x8xf32>
    %28 = math.exp %27 : vector<8x8xf32>
    %cst_15 = arith.constant 0.000000e+00 : f32
    %29 = vector.broadcast %cst_15 : f32 to vector<8x8xf32>
    %30 = arith.select %21, %28, %29 : vector<8x8xi1>, vector<8x8xf32>
    %cst_16 = arith.constant dense<0.000000e+00> : vector<8xf32>
    %31 = vector.multi_reduction <add>, %30, %cst_16 [1] : vector<8x8xf32> to vector<8xf32>
    %32 = vector.shape_cast %31 : vector<8xf32> to vector<8x1xf32>
    %cst_17 = arith.constant 1.000000e-30 : f32
    %33 = vector.broadcast %cst_17 : f32 to vector<8x1xf32>
    %34 = arith.maximumf %32, %33 : vector<8x1xf32>
    %35 = tpu.reciprocal %34 {approx = true} : vector<8x1xf32> -> vector<8x1xf32>
    %36 = vector.broadcast %35 : vector<8x1xf32> to vector<8x8xf32>
    %37 = arith.mulf %30, %36 : vector<8x8xf32>
    %cst_18 = arith.constant dense<0.000000e+00> : vector<8x8xf32>
    %38 = tpu.matmul %37, %3, %cst_18 {dimension_numbers = #tpu.dot_dimension_numbers<[1], [0], [0], [1], [0, 0, 1, 1], [], []>} : vector<8x8xf32>, vector<8x8xf32>, vector<8x8xf32> -> vector<8x8xf32>
    %c0_19 = arith.constant 0 : index
    %c0_20 = arith.constant 0 : index
    %c0_21 = arith.constant 0 : index
    %39 = vector.load %arg5[%c0_19, %c0_20, %c0_21] : memref<1x1x8xf32, #tpu.memory_space<vmem>>, vector<1x1x8xf32>
    %40 = vector.shape_cast %39 : vector<1x1x8xf32> to vector<1x8xf32>
    %41 = vector.broadcast %40 : vector<1x8xf32> to vector<8x8xf32>
    %42 = arith.addf %38, %41 : vector<8x8xf32>
    %cst_22 = arith.constant 0.000000e+00 : f32
    %43 = vector.broadcast %cst_22 : f32 to vector<8x8xf32>
    %44 = arith.cmpf ogt, %42, %43 : vector<8x8xf32>
    %cst_23 = arith.constant 0.000000e+00 : f32
    %45 = vector.broadcast %cst_23 : f32 to vector<8x8xf32>
    %46 = arith.minimumf %42, %45 : vector<8x8xf32>
    %47 = math.exp %46 : vector<8x8xf32>
    %cst_24 = arith.constant 1.000000e+00 : f32
    %48 = vector.broadcast %cst_24 : f32 to vector<8x8xf32>
    %49 = arith.subf %47, %48 : vector<8x8xf32>
    %50 = arith.select %44, %42, %49 : vector<8x8xi1>, vector<8x8xf32>
    %c0_25 = arith.constant 0 : index
    %c0_26 = arith.constant 0 : index
    %c0_27 = arith.constant 0 : index
    %51 = vector.load %arg6[%c0_25, %c0_26, %c0_27] : memref<1x8x8xf32, #tpu.memory_space<vmem>>, vector<1x8x8xf32>
    %52 = vector.shape_cast %51 : vector<1x8x8xf32> to vector<8x8xf32>
    %53 = vector.shape_cast %50 : vector<8x8xf32> to vector<1x8x8xf32>
    tpu.vector_store %arg6[%c0_25, %c0_26, %c0_27], %53 {strides = array<i32>} : memref<1x8x8xf32, #tpu.memory_space<vmem>>, vector<1x8x8xf32>,
    return
  }
  func.func @transform_0(%arg0: i32) -> (i32, i32) {
    %c0_i32 = arith.constant 0 : i32
    %c0_i32_0 = arith.constant 0 : i32
    %c0_i32_1 = arith.constant 0 : i32
    return %c0_i32, %c0_i32_0 : i32, i32
  }
  func.func @transform_1(%arg0: i32) -> (i32, i32, i32) {
    %c0_i32 = arith.constant 0 : i32
    %c0_i32_0 = arith.constant 0 : i32
    %c0_i32_1 = arith.constant 0 : i32
    return %arg0, %c0_i32, %c0_i32_0 : i32, i32, i32
  }
  func.func @transform_2(%arg0: i32) -> (i32, i32, i32) {
    %c0_i32 = arith.constant 0 : i32
    %c0_i32_0 = arith.constant 0 : i32
    %c0_i32_1 = arith.constant 0 : i32
    return %arg0, %c0_i32, %c0_i32_0 : i32, i32, i32
  }
  func.func @transform_3(%arg0: i32) -> (i32, i32) {
    %c0_i32 = arith.constant 0 : i32
    %c0_i32_0 = arith.constant 0 : i32
    %c0_i32_1 = arith.constant 0 : i32
    return %c0_i32, %c0_i32_0 : i32, i32
  }
  func.func @transform_4(%arg0: i32) -> (i32, i32, i32) {
    %c0_i32 = arith.constant 0 : i32
    %c0_i32_0 = arith.constant 0 : i32
    %c0_i32_1 = arith.constant 0 : i32
    return %arg0, %c0_i32, %c0_i32_0 : i32, i32, i32
  }
  func.func @transform_5(%arg0: i32) -> (i32, i32, i32) {
    %c0_i32 = arith.constant 0 : i32
    %c0_i32_0 = arith.constant 0 : i32
    %c0_i32_1 = arith.constant 0 : i32
    return %arg0, %c0_i32, %c0_i32_0 : i32, i32, i32
  }
}

</mosaic_0001>

<bundles_post_ra>
// kernel: tpu_custom_call.1
= control target key start
LH: loop header
LB: loop body
LE: loop exit
PB: predicated region body
PF: predicated region fallthrough
CT: control target
= control target key end

     0   :  { %10 = vsyncpa [#allocation3], 0  ;;  %s764_s0 = inlined_call_operand.vmem [shape: f32[8,16], index: 0, kind: input, shape index: {}]   ;;  %s765_s1 = inlined_call_operand.vmem [shape: f32[2,16,8], index: 1, kind: input, shape index: {}]   ;;  %s766_s2 = inlined_call_operand.vmem [shape: f32[2,8,2], index: 2, kind: input, shape index: {}]   ;;  %s767_s3 = inlined_call_operand.vmem [shape: s8[8,8], index: 3, kind: input, shape index: {}]   ;;  %s768_s4 = inlined_call_operand.vmem [shape: f32[2,1,8], index: 4, kind: input, shape index: {}]   ;;  %s769_s5 = inlined_call_operand.hbm [shape: f32[2,8,8], index: 5, kind: output, shape index: {}]  }
   0x1   :  { %12 = vsyncpa [#allocation3 + $0x1], 0  ;;  %s657_s18 = smov 0   ;;  %s659_s19 = smov 0  }
   0x2   :  { %s661_s20 = smov 0   ;;  %s663_s21 = smov 0  }
   0x3 LB: > { %s678_s22 = sadd.s32 4294967295, %s624_s21   ;;  %s496_s23 = sadd.s32 4294967294, %s624_s21   ;;  %s624_s21 = sphi %s663_s21, %s775_s21   ;;  %s620_s20 = sphi %s661_s20, %s774_s20   ;;  %s616_s19 = sphi %s659_s19, %s773_s19   ;;  %s612_s18 = sphi %s657_s18, %s772_s18  }
   0x4   : > { %s682_s24 = sadd.s32 1, %s624_s21   ;;  %s145_s25 = sadd.s32 1, %s620_s20 }
   0x5   : > { %s142_s26 = ssub.s32 %s624_s21, %s682_s24  ;;  %p155_p0 = scmp.ne.s32.totalorder %s620_s20, %s616_s19 }
   0x6   : > { %p143_p1 = scmp.eq.s32.totalorder %s142_s26, 0  ;;  %p156_p2 = scmp.eq.s32.totalorder %s678_s22, 1 }
   0x7   : > { %p161_p3 = scmp.ne.s32.totalorder %s616_s19, %s612_s18  ;;  %p162_p4 = scmp.eq.s32.totalorder %s496_s23, 1 }
   0x8   : > { %s693_s27 = scalar_select %p143_p1, %s620_s20, %s145_s25  }
   0x9   : > { %p695_p5 = por %p156_p2, %p155_p0  ;;  %p699_p6 = por %p162_p4, %p161_p3 }
   0xa   : > { %p499_p7 = scmp.ge.s32.totalorder %s624_s21, 1  ;;  %p207_p8 = scmp.lt.s32.totalorder %s624_s21, 3 }
   0xc   : > { %p208_p9 = pnand %p499_p7, %p207_p8 }
   0xd   : > { %p242_p10 = scmp.lt.s32.totalorder (!%p208_p9), %s678_s22, 1  ;;  %s509_s8 = sshll.u32 (!%p208_p9), %s678_s22, 3 }
   0xe   : > { %211 = sbr.rel (%p208_p9) target bundleno = 894 (0x37e), region = 40  ;;  %s582_s23 = scalar_lea.hbm (!%p208_p9), %s769_s5, 16 }
  0x13   : > { %s707_s30 = scalar_select %p242_p10, %s678_s22, 1  ;;  %v254_v2 = vld [vmem:[%s764_s0] sm:$0xff]  ;;  %vm257_vm0 = vcmask 130048   ;;  %v626_v4 = vmov 1   ;;  %vm282_vm1 = vcmask 64512  }
  0x14   : > { %554 = vset.pattern.permute.xlu0 %v626_v4  ;;  %v348_v8 = vld [vmem:[%s767_s3] sm:$0x3] }
  0x15   : > { %s512_s6 = sshll.u32 %s707_s30, 4  ;;  %s503_s12 = sshll.u32 %s707_s30, 3  ;;  %v349_v9 = vunpack.c.0.s8 %v348_v8 }
  0x16   : > { %s246_s9 = scalar_lea.vmem %s765_s1, %s512_s6  ;;  %s250_s15 = scalar_lea.vmem %s766_s2, %s503_s12 }
  0x17   : > { %v256_v0 = vld [vmem:[%s246_s9 + $0x8] sm:$0xff]  ;;  %v255_v1 = vld [vmem:[%s246_s9] sm:$0xff]  ;;  %v350_v12 = vcvt.s32.f32 %v349_v9  ;;  %s253_s26 = scalar_lea.vmem %s768_s4, %s707_s30  ;;  %s239_s6 = sand.u32 1, %s616_s19  }
  0x18   : > { %275 = vmatpush.msra.mxu0 %v256_v0  ;;  %v281_v3 = vld [vmem:[%s250_s15] sm:$0xff]  ;;  %s500_s7 = sshll.u32 %s239_s6, 3  ;;  %s411_s30 = scalar_lea.hbm %s769_s5, %s509_s8 }
  0x19   : > { %301 = vmatpush.msra.mxu1 %v281_v3  ;;  %vm351_vm3 = vcmp.gt.f32.partialorder %v350_v12, 0.0  ;;  %v555_v28 = vld [vmem:[%s253_s26] ss:$0 sm:$0xff]  ;;  %s241_s11 = scalar_lea.vmem [#allocation2], %s500_s7  ;;  %s415_s13 = sshll.u32 %s411_s30, 4  ;;  %s416_s13 = int_to_ptr.hbm [resolvable:$true] %s415_s13 }
  0x1a   : > { %276 = vmatpush.msra.mxu0 %v255_v1  ;;  %s413_s12 = sshll.u32 %s241_s11, 4  ;;  %s401_s14 = scalar_lea.sflag [#allocation3], %s239_s6  ;;  %s414_s12 = int_to_ptr.vmem [resolvable:$true] %s413_s12 }
  0x1b   : > { %504 = vmatmul.msk.f32.vlgmr.msra.gmra.mxu0 %vm257_vm0, %v254_v2  ;;  %s576_s15 = sshra.s32 %s416_s13, 4  ;;  %s577_s15 = int_to_ptr.hbm [resolvable:$true] %s576_s15 }
  0x1c   : > { %s578_s22 = scalar_lea.hbm %s577_s15, 8  ;;  %p583_p0 = scmp.lt.s32.totalorder %s577_s15, %s769_s5 }
  0x1d   : > { %p579_p11 = scmp.ne.s32.totalorder %s577_s15, %s578_s22  ;;  %p584_p1 = scmp.lt.s32.totalorder %s582_s23, %s578_s22 }
  0x1f   : > { %p580_p12 = pnand %p579_p11, %p695_p5  ;;  %p585_p2 = por %p584_p1, %p583_p0 }
  0x21   : > { %p581_p13 = pneg %p580_p12 }
  0x23   : > { %p586_p3 = pnand %p585_p2, %p581_p13 }
  0x98   : > { %v278_v5 = vpop.f32.mrf.mxu0 }
  0x99   : > { %505 = vmatmul.msk.f32.vlgmr.msra.gmra.mxu1 %vm282_vm1, %v278_v5  ;;  %388 = vmatpush.msra.mxu2 %v278_v5 }
 0x116   : > { %v303_v6 = vpop.f32.mrf.mxu1 }
 0x117   : > { %340 = vperm.xlu0 %554, %v303_v6  }
 0x139   : > { %306 = vxpose.xlu0.b32.start.end [1/1] (short) (narrow) %v303_v6, 8 }
 0x189   : > { %v341_v7 = vpop.permute.xlu0 %340 }
 0x1dd   : > { %v322_v10 = vpop.trf.xlu0 }
 0x1de   : > { %v343_v11 = vperm.slane %v322_v10, 0 }
 0x1e0   : > { %v344_v13 = vadd.f32 %v343_v11, %v341_v7 }
 0x1e2   : > { %vm345_vm2 = vcmp.gt.f32.partialorder %v344_v13, 0.0  ;;  %v346_v14 = vmul.f32 0.2, %v344_v13 }
 0x1e4   : > { %v347_v15 = vsel %vm345_vm2, %v344_v13, %v346_v14 }
 0x1e5   : > { %v352_v16 = vsel %vm351_vm3, %v347_v15, -1.7014117e+38 }
 0x1e6   : > { %v353_v17 = vsel %vm282_vm1, %v352_v16, -inf }
 0x1e7   : > { %354 = vmax.xlane.f32.xlu1 %v353_v17 }
 0x25a   : > { %v355_v18 = vpop.xlane.xlu1 %354 }
 0x25b   : > { %v356_v19 = vsub.f32 %v352_v16, %v355_v18 }
 0x25d   : > { %v357_v20 = vmul.f32 1.442695, %v356_v19 }
 0x25f   : > { %556 = vpow2.f32 %v357_v20 }
 0x265   : > { %v557_v21 = vpop.eup %556 }
 0x266   : > { %v359_v22 = vsel %vm351_vm3, %v557_v21, 0.0 }
 0x267   : > { %v360_v23 = vsel %vm282_vm1, %v359_v22, 0.0 }
 0x268   : > { %361 = vadd.xlane.f32.xlu1 %v360_v23 }
 0x2db   : > { %v362_v24 = vpop.xlane.xlu1 %361 }
 0x2dc   : > { %v363_v25 = vmax.f32 %v362_v24, 1e-30 }
 0x2de   : > { %558 = vrcp.f32 %v363_v25 }
 0x2e4   : > { %v559_v26 = vpop.eup %558 }
 0x2e5   : > { %v365_v27 = vmul.f32 %v559_v26, %v359_v22 }
 0x2e7   : > { %506 = vmatmul.msk.f32.vlgmr.msra.gmra.mxu2 %vm282_vm1, %v365_v27 }
 0x36a   : > { %v390_v29 = vpop.f32.mrf.mxu2 }
 0x36b   : > { %v391_v30 = vadd.f32 %v555_v28, %v390_v29 }
 0x36d   : > { %v394_v31 = vmin.f32 %v391_v30, 0.0  ;;  %vm393_vm4 = vcmp.gt.f32.partialorder %v391_v30, 0.0 }
 0x36f   : > { %v395_v32 = vmul.f32 1.442695, %v394_v31 }
 0x371   : > { %560 = vpow2.f32 %v395_v32 }
 0x377   : > { %v561_v33 = vpop.eup %560 }
 0x378   : > { %v507_v34 = vadd.f32 -1.0, %v561_v33 }
 0x37a   : > { %v398_v35 = vsel %vm393_vm4, %v391_v30, %v507_v34 }
 0x37b   : > { %399 = vst.msk [vmem:[%s241_s11] sm:$0xff] %vm282_vm1, %v398_v35 }
 0x37c   : > { %589 = shalt.err (!%p586_p3)
}
 0x37d   : > { %513 = dma.vmem_to_hbm [thread:$0]  (%p695_p5), %s414_s12, 128, %s416_s13, %s401_s14  }
 0x37e PF: > { %p519_p4 = scmp.ge.s32.totalorder %s624_s21, 2  ;;  %s427_s6 = sand.u32 1, %s612_s18  }
 0x37f   : > { %s428_s7 = scalar_lea.sflag [#allocation3], %s427_s6 }
 0x380   : > { %p516_p7 = pnand %p519_p4, %p699_p6 }
 0x382   : > { %p517_p8 = pneg %p516_p7 }
 0x384   : > { %607 = dma.done.wait (%p517_p8), %s428_s7, 128  }
 0x385   : > { %609 = vsyncadd (%p517_p8), %s428_s7, 4294967168  ;;  %p15_p9 = scmp.ge.s32.totalorder %s682_s24, 4   ;;  %s772_s18 = smov %s616_s19 }
 0x386   : > { %s773_s19 = smov %s620_s20  ;;  %s774_s20 = smov %s693_s27 }
 0x387   : > { %s775_s21 = smov %s682_s24  ;;  %17 = sbr.rel (!%p15_p9) target bundleno = 3 (0x3), region = 81 }
 0x38c   :  { %434 = vsyncpa [#allocation3], 1 }
 0x38d   :  { %436 = vsyncpa [#allocation3 + $0x1], 1 }

</bundles_post_ra>
